<compile_context>
chip_gen: v5e
topology: v5e:2x2
jax: 0.10.0
libtpu: 0.0.40
codegen_flags: <defaults>
</compile_context>

<pallas_src>
import functools

import jax
import jax.numpy as jnp
from jax.experimental import pallas as pl
from jax.experimental.pallas import tpu as pltpu

# ---- module constants (from the PyTorch spec) --------------------------------
ENC_PROJECTION_DIM = 128
MASK_PROPORTION = 0.75
IMAGE_SIZE = 48
PATCH_SIZE = 6
NUM_PATCHES = (IMAGE_SIZE // PATCH_SIZE) ** 2          # 64
PATCH_DIM = PATCH_SIZE * PATCH_SIZE * 3                # 108


# ---- Pallas kernel -----------------------------------------------------------
def _make_kernel(Bb, N, M, U, D):
    """Kernel over one batch block of Bb elements, flattened to Bb*N rows."""
    BbN = Bb * N
    S = M + 2 * U                                       # output rows per batch element

    def kernel(tgt_ref, patches_ref, w_ref, pos3_ref, vec_ref, out_ref):
        # tgt_ref:     (BbN, 1)   int32  local block-diagonal target column per row
        # patches_ref: (BbN, Pp)  bf16   zero-padded patches, batch-flattened
        # w_ref:       (Pp, D)    bf16   zero-padded projection weight (W^T)
        # pos3_ref:    (BbN, 3D)  bf16   [pos_hi | pos_mid | pos_lo], replicated per batch
        # vec_ref:     (2, D)     f32    row 0: bias, row 1: mask_token @ W + bias
        # out_ref:     (Bb*S, D)  f32    per batch: [masked_emb | unmasked_emb | unmasked_pos]

        # (1) Project ALL patches in one bf16 MXU pass (f32 accumulate); fold bias in.
        proj = jnp.dot(patches_ref[...], w_ref[...],
                       preferred_element_type=jnp.float32)              # (BbN, D) f32
        projb = (proj + vec_ref[0:1, :]).astype(jnp.bfloat16)           # (BbN, D) bf16

        # (2) Block-diagonal permutation one-hot, built directly in 2D as bf16.
        #     Row b*N+i selects column b*N + rand_indices[b, i].  Assumes rand_indices
        #     is a valid permutation (torch.rand + argsort) → exactly one 1 per row.
        col = jax.lax.broadcasted_iota(jnp.int32, (BbN, BbN), 1)
        perm_oh = (tgt_ref[...] == col).astype(jnp.bfloat16)            # (BbN, BbN)

        # (3) ONE fused permutation matmul gathers the exact f32 positions
        #     (hi+mid+lo bf16 split, recombined in f32) and the projected patches.
        rhs = jnp.concatenate([pos3_ref[...], projb], axis=-1)          # (BbN, 4D) bf16
        g = jnp.dot(perm_oh, rhs, preferred_element_type=jnp.float32)   # (BbN, 4D) f32

        pos_g = g[:, 0:D] + g[:, D:2 * D] + g[:, 2 * D:3 * D]           # exact gathered pos
        emb_g = g[:, 3 * D:4 * D] + pos_g                               # proj + bias + pos

        # (4) Write the merged lane-dense output slab (static unroll over Bb).
        mask_proj = vec_ref[1:2, :]                                     # (1, D)
        for b in range(Bb):
            src = b * N
            dst = b * S
            out_ref[dst:dst + M, :] = pos_g[src:src + M, :] + mask_proj      # masked_embeddings
            out_ref[dst + M:dst + M + U, :] = emb_g[src + M:src + N, :]      # unmasked_embeddings
            out_ref[dst + M + U:dst + S, :] = pos_g[src + M:src + N, :]      # unmasked_positions

    return kernel


# ---- wrapper -----------------------------------------------------------------
def _pick_batch_block(B, N, target_rows=256, max_rows=512):
    """Largest divisor of B with Bb*N <= max_rows, stopping once Bb*N >= target.

    The kernel is per-grid-step-overhead bound, so fatter blocks win; max_rows caps
    the (Bb*N)^2 block-diagonal one-hot.
    TODO(synk): on v7x consider capping Bb at B//2 for B > 2 so both TensorCores
    get a grid step under dimension_semantics=("parallel",).
    """
    best = 1
    for bb in range(1, B + 1):
        if B % bb == 0 and bb * N <= max_rows:
            best = bb
            if bb * N >= target_rows:
                break
    return best


@functools.partial(jax.jit, static_argnames=("mask_proportion",))
def patch_encoder_forward(patches, w_t, bias, pos_table, mask_token, rand_indices,
                          mask_proportion=MASK_PROPORTION):
    """Non-downstream forward of PatchEncoder.

    patches:      (B, N, P) float32
    w_t:          (P, D)    float32  (transpose of the torch Linear weight)
    bias:         (D,)      float32
    pos_table:    (NUM_PATCHES, D) float32 embedding table
    mask_token:   (1, P)    float32
    rand_indices: (B, N)    int32 — MUST be a permutation of [0, N) per row.
    """
    B, N, P = patches.shape
    D = w_t.shape[1]
    M = int(mask_proportion * N)        # num_mask
    U = N - M                           # num_unmask
    S = M + 2 * U

    mask_indices = rand_indices[:, :M]
    unmask_indices = rand_indices[:, M:]

    # -- host-side prep (batch-invariant params + pure layout glue) -----------
    Pp = ((P + 127) // 128) * 128                        # pad contraction dim to 128
    patches_p = (jnp.pad(patches, ((0, 0), (0, 0), (0, Pp - P)))
                 .astype(jnp.bfloat16).reshape(B * N, Pp))
    w_p = jnp.pad(w_t, ((0, Pp - P), (0, 0))).astype(jnp.bfloat16)

    # Exact 3-way bf16 split of the f32 position table: pos == hi + mid + lo (in f32).
    pos = pos_table[:N].astype(jnp.float32)
    p_hi = pos.astype(jnp.bfloat16)
    r1 = pos - p_hi.astype(jnp.float32)
    p_mid = r1.astype(jnp.bfloat16)
    r2 = r1 - p_mid.astype(jnp.float32)
    p_lo = r2.astype(jnp.bfloat16)
    pos3 = jnp.concatenate([p_hi, p_mid, p_lo], axis=-1)            # (N, 3D) bf16

    # Bias + batch-invariant mask-token projection stacked into one (2, D) input.
    bias_f = bias.astype(jnp.float32).reshape(1, D)
    mask_proj = jnp.dot(mask_token.astype(jnp.float32), w_t.astype(jnp.float32),
                        precision=jax.lax.Precision.HIGHEST) + bias_f
    vec = jnp.concatenate([bias_f, mask_proj], axis=0)              # (2, D)

    Bb = _pick_batch_block(B, N)
    n_steps = B // Bb

    pos3_rep = jnp.tile(pos3, (B, 1))                               # (B*N, 3D)
    # Local (within-block) block-diagonal target column for every flattened row.
    local_b = (jnp.arange(B, dtype=jnp.int32) % Bb)[:, None]
    tgt = (local_b * N + rand_indices.astype(jnp.int32)).reshape(B * N, 1)

    kernel = _make_kernel(Bb, N, M, U, D)
    slab = pl.pallas_call(
        kernel,
        out_shape=jax.ShapeDtypeStruct((B * S, D), jnp.float32),
        grid=(n_steps,),
        in_specs=[
            pl.BlockSpec((Bb * N, 1), lambda s: (s, 0)),            # target columns (int32)
            pl.BlockSpec((Bb * N, Pp), lambda s: (s, 0)),           # patches (bf16)
            pl.BlockSpec((Pp, D), lambda s: (0, 0)),                # weight (bf16)
            pl.BlockSpec((Bb * N, 3 * D), lambda s: (s, 0)),        # pos hi/mid/lo (bf16)
            pl.BlockSpec((2, D), lambda s: (0, 0)),                 # [bias; mask_proj] (f32)
        ],
        out_specs=pl.BlockSpec((Bb * S, D), lambda s: (s, 0)),
        compiler_params=pltpu.CompilerParams(dimension_semantics=("parallel",)),
    )(tgt, patches_p, w_p, pos3_rep, vec)

    slab = slab.reshape(B, S, D)
    mask_emb = slab[:, :M]
    unmask_emb = slab[:, M:M + U]
    unmask_pos = slab[:, M + U:]
    return unmask_emb, mask_emb, unmask_pos, mask_indices, unmask_indices


# ---- pure-JAX reference (for a sanity check) ---------------------------------
def reference_forward(patches, w_t, bias, pos_table, mask_token, rand_indices,
                      mask_proportion=MASK_PROPORTION):
    B, N, P = patches.shape
    D = w_t.shape[1]
    num_mask = int(mask_proportion * N)
    pos = jnp.broadcast_to(pos_table[:N], (B, N, D))
    patch_emb = jnp.einsum("bnp,pd->bnd", patches, w_t,
                           precision=jax.lax.Precision.HIGHEST) + bias + pos
    mask_idx = rand_indices[:, :num_mask]
    unmask_idx = rand_indices[:, num_mask:]
    gather = lambda x, idx: jnp.take_along_axis(x, idx[..., None], axis=1)
    unmask_emb = gather(patch_emb, unmask_idx)
    unmask_pos = gather(pos, unmask_idx)
    masked_pos = gather(pos, mask_idx)
    mask_proj = jnp.dot(mask_token, w_t,
                        precision=jax.lax.Precision.HIGHEST) + bias     # (1, D)
    mask_emb = masked_pos + mask_proj[None]
    return unmask_emb, mask_emb, unmask_pos, mask_idx, unmask_idx


# ---- main --------------------------------------------------------------------
if __name__ == "__main__":
    key = jax.random.PRNGKey(0)
    k_patch, k_mask, k_w, k_b, k_pos, k_rand = jax.random.split(key, 6)

    B, N, P, D = 2, NUM_PATCHES, PATCH_DIM, ENC_PROJECTION_DIM

    # deterministic synthetic parameters (shapes from PatchEncoder.__init__)
    mask_token = jax.random.normal(k_mask, (1, P), dtype=jnp.float32)
    w_t = jax.random.normal(k_w, (P, D), dtype=jnp.float32) * 0.02   # Linear weight^T
    bias = jax.random.normal(k_b, (D,), dtype=jnp.float32) * 0.02
    pos_table = jax.random.normal(k_pos, (NUM_PATCHES, D), dtype=jnp.float32) * 0.02

    # inputs
    patches = jax.random.normal(k_patch, (B, N, P), dtype=jnp.float32)
    # TODO(synk): torch.rand + argsort permutation has no Pallas equivalent — host RNG glue.
    rand_indices = jnp.argsort(jax.random.uniform(k_rand, (B, N)), axis=-1).astype(jnp.int32)

    outs = patch_encoder_forward(patches, w_t, bias, pos_table, mask_token, rand_indices)
    outs = jax.block_until_ready(outs)

    refs = reference_forward(patches, w_t, bias, pos_table, mask_token, rand_indices)
    # NOTE: patches/W go through the MXU as bf16 operands (f32 accumulate), a deliberate
    # ~1e-3 precision downgrade vs the f32 reference; gathered positions are exact.
    names = ("unmasked_embeddings", "masked_embeddings", "unmasked_positions")
    for name, o, r in zip(names, outs[:3], refs[:3]):
        assert jnp.allclose(o, r, rtol=2e-2, atol=2e-2), f"mismatch vs reference: {name}"
    assert jnp.array_equal(outs[3], refs[3]) and jnp.array_equal(outs[4], refs[4])

    print("KERNEL_OK")
</pallas_src>

<mosaic_0001>
module attributes {stable_mosaic.version = 11 : i64} {
  func.func @kernel(%arg0: i32, %arg1: memref<128x1xi32, #tpu.memory_space<vmem>>, %arg2: memref<128x128xbf16, #tpu.memory_space<vmem>>, %arg3: memref<128x128xbf16, #tpu.memory_space<vmem>>, %arg4: memref<128x384xbf16, #tpu.memory_space<vmem>>, %arg5: memref<2x128xf32, #tpu.memory_space<vmem>>, %arg6: memref<160x128xf32, #tpu.memory_space<vmem>>) attributes {dimension_semantics = [#tpu.dimension_semantics<parallel>], iteration_bounds = array<i64: 1>, scalar_prefetch = 0 : i64, scratch_operands = 0 : i64, tpu.core_type = #tpu.core_type<tc>, window_params = [{transform_indices = @transform_0, window_bounds = array<i64: 128, 1>}, {transform_indices = @transform_1, window_bounds = array<i64: 128, 128>}, {pipeline_mode = #tpu.pipeline_mode<synchronous>, transform_indices = @transform_2, window_bounds = array<i64: 128, 128>}, {transform_indices = @transform_3, window_bounds = array<i64: 128, 384>}, {pipeline_mode = #tpu.pipeline_mode<synchronous>, transform_indices = @transform_4, window_bounds = array<i64: 2, 128>}, {transform_indices = @transform_5, window_bounds = array<i64: 160, 128>}]} {
    %c0 = arith.constant 0 : index
    %c0_0 = arith.constant 0 : index
    %0 = vector.load %arg2[%c0, %c0_0] : memref<128x128xbf16, #tpu.memory_space<vmem>>, vector<128x128xbf16>
    %c0_1 = arith.constant 0 : index
    %c0_2 = arith.constant 0 : index
    %1 = vector.load %arg3[%c0_1, %c0_2] : memref<128x128xbf16, #tpu.memory_space<vmem>>, vector<128x128xbf16>
    %cst = arith.constant dense<0.000000e+00> : vector<128x128xf32>
    %2 = tpu.matmul %0, %1, %cst {dimension_numbers = #tpu.dot_dimension_numbers<[1], [0], [0], [1], [0, 0, 1, 1], [], []>} : vector<128x128xbf16>, vector<128x128xbf16>, vector<128x128xf32> -> vector<128x128xf32>
    %c0_3 = arith.constant 0 : index
    %c0_4 = arith.constant 0 : index
    %3 = vector.load %arg5[%c0_3, %c0_4] : memref<2x128xf32, #tpu.memory_space<vmem>>, vector<1x128xf32>
    %4 = vector.broadcast %3 : vector<1x128xf32> to vector<128x128xf32>
    %5 = arith.addf %2, %4 : vector<128x128xf32>
    %6 = arith.truncf %5 : vector<128x128xf32> to vector<128x128xbf16>
    %7 = tpu.iota {dimensions = array<i32: 1>} : vector<128x128xi32>
    %c0_5 = arith.constant 0 : index
    %c0_6 = arith.constant 0 : index
    %8 = vector.load %arg1[%c0_5, %c0_6] : memref<128x1xi32, #tpu.memory_space<vmem>>, vector<128x1xi32>
    %9 = vector.broadcast %8 : vector<128x1xi32> to vector<128x128xi32>
    %10 = arith.cmpi eq, %9, %7 : vector<128x128xi32>
    %11 = arith.extui %10 : vector<128x128xi1> to vector<128x128xi32>
    %12 = arith.sitofp %11 : vector<128x128xi32> to vector<128x128xf32>
    %13 = arith.truncf %12 : vector<128x128xf32> to vector<128x128xbf16>
    %c0_7 = arith.constant 0 : index
    %c0_8 = arith.constant 0 : index
    %14 = vector.load %arg4[%c0_7, %c0_8] : memref<128x384xbf16, #tpu.memory_space<vmem>>, vector<128x384xbf16>
    %15 = tpu.concatenate %14, %6 in 1 : vector<128x384xbf16>, vector<128x128xbf16> -> vector<128x512xbf16>
    %cst_9 = arith.constant dense<0.000000e+00> : vector<128x512xf32>
    %16 = tpu.matmul %13, %15, %cst_9 {dimension_numbers = #tpu.dot_dimension_numbers<[1], [0], [0], [1], [0, 0, 1, 1], [], []>} : vector<128x128xbf16>, vector<128x512xbf16>, vector<128x512xf32> -> vector<128x512xf32>
    %17 = vector.extract_strided_slice %16 {offsets = [0, 0], sizes = [128, 128], strides = [1, 1]} : vector<128x512xf32> to vector<128x128xf32>
    %18 = vector.extract_strided_slice %16 {offsets = [0, 128], sizes = [128, 128], strides = [1, 1]} : vector<128x512xf32> to vector<128x128xf32>
    %19 = arith.addf %17, %18 : vector<128x128xf32>
    %20 = vector.extract_strided_slice %16 {offsets = [0, 256], sizes = [128, 128], strides = [1, 1]} : vector<128x512xf32> to vector<128x128xf32>
    %21 = arith.addf %19, %20 : vector<128x128xf32>
    %22 = vector.extract_strided_slice %16 {offsets = [0, 384], sizes = [128, 128], strides = [1, 1]} : vector<128x512xf32> to vector<128x128xf32>
    %23 = arith.addf %22, %21 : vector<128x128xf32>
    %c1 = arith.constant 1 : index
    %c0_10 = arith.constant 0 : index
    %24 = vector.load %arg5[%c1, %c0_10] : memref<2x128xf32, #tpu.memory_space<vmem>>, vector<1x128xf32>
    %25 = vector.extract_strided_slice %21 {offsets = [0, 0], sizes = [48, 128], strides = [1, 1]} : vector<128x128xf32> to vector<48x128xf32>
    %26 = vector.broadcast %24 : vector<1x128xf32> to vector<48x128xf32>
    %27 = arith.addf %25, %26 : vector<48x128xf32>
    %c0_11 = arith.constant 0 : index
    %c0_12 = arith.constant 0 : index
    %28 = vector.load %arg6[%c0_11, %c0_12] : memref<160x128xf32, #tpu.memory_space<vmem>>, vector<48x128xf32>
    tpu.vector_store %arg6[%c0_11, %c0_12], %27 {strides = array<i32>} : memref<160x128xf32, #tpu.memory_space<vmem>>, vector<48x128xf32>,
    %29 = vector.extract_strided_slice %23 {offsets = [48, 0], sizes = [16, 128], strides = [1, 1]} : vector<128x128xf32> to vector<16x128xf32>
    %c48 = arith.constant 48 : index
    %c0_13 = arith.constant 0 : index
    %30 = vector.load %arg6[%c48, %c0_13] : memref<160x128xf32, #tpu.memory_space<vmem>>, vector<16x128xf32>
    tpu.vector_store %arg6[%c48, %c0_13], %29 {strides = array<i32>} : memref<160x128xf32, #tpu.memory_space<vmem>>, vector<16x128xf32>,
    %31 = vector.extract_strided_slice %21 {offsets = [48, 0], sizes = [16, 128], strides = [1, 1]} : vector<128x128xf32> to vector<16x128xf32>
    %c64 = arith.constant 64 : index
    %c0_14 = arith.constant 0 : index
    %32 = vector.load %arg6[%c64, %c0_14] : memref<160x128xf32, #tpu.memory_space<vmem>>, vector<16x128xf32>
    tpu.vector_store %arg6[%c64, %c0_14], %31 {strides = array<i32>} : memref<160x128xf32, #tpu.memory_space<vmem>>, vector<16x128xf32>,
    %33 = vector.extract_strided_slice %21 {offsets = [64, 0], sizes = [48, 128], strides = [1, 1]} : vector<128x128xf32> to vector<48x128xf32>
    %34 = vector.broadcast %24 : vector<1x128xf32> to vector<48x128xf32>
    %35 = arith.addf %33, %34 : vector<48x128xf32>
    %c80 = arith.constant 80 : index
    %c0_15 = arith.constant 0 : index
    %36 = vector.load %arg6[%c80, %c0_15] : memref<160x128xf32, #tpu.memory_space<vmem>>, vector<48x128xf32>
    tpu.vector_store %arg6[%c80, %c0_15], %35 {strides = array<i32>} : memref<160x128xf32, #tpu.memory_space<vmem>>, vector<48x128xf32>,
    %37 = vector.extract_strided_slice %23 {offsets = [112, 0], sizes = [16, 128], strides = [1, 1]} : vector<128x128xf32> to vector<16x128xf32>
    %c128 = arith.constant 128 : index
    %c0_16 = arith.constant 0 : index
    %38 = vector.load %arg6[%c128, %c0_16] : memref<160x128xf32, #tpu.memory_space<vmem>>, vector<16x128xf32>
    tpu.vector_store %arg6[%c128, %c0_16], %37 {strides = array<i32>} : memref<160x128xf32, #tpu.memory_space<vmem>>, vector<16x128xf32>,
    %39 = vector.extract_strided_slice %21 {offsets = [112, 0], sizes = [16, 128], strides = [1, 1]} : vector<128x128xf32> to vector<16x128xf32>
    %c144 = arith.constant 144 : index
    %c0_17 = arith.constant 0 : index
    %40 = vector.load %arg6[%c144, %c0_17] : memref<160x128xf32, #tpu.memory_space<vmem>>, vector<16x128xf32>
    tpu.vector_store %arg6[%c144, %c0_17], %39 {strides = array<i32>} : memref<160x128xf32, #tpu.memory_space<vmem>>, vector<16x128xf32>,
    return
  }
  func.func @transform_0(%arg0: i32) -> (i32, i32) {
    %c0_i32 = arith.constant 0 : i32
    %c0_i32_0 = arith.constant 0 : i32
    return %arg0, %c0_i32 : i32, i32
  }
  func.func @transform_1(%arg0: i32) -> (i32, i32) {
    %c0_i32 = arith.constant 0 : i32
    %c0_i32_0 = arith.constant 0 : i32
    return %arg0, %c0_i32 : i32, i32
  }
  func.func @transform_2(%arg0: i32) -> (i32, i32) {
    %c0_i32 = arith.constant 0 : i32
    %c0_i32_0 = arith.constant 0 : i32
    %c0_i32_1 = arith.constant 0 : i32
    return %c0_i32, %c0_i32_0 : i32, i32
  }
  func.func @transform_3(%arg0: i32) -> (i32, i32) {
    %c0_i32 = arith.constant 0 : i32
    %c0_i32_0 = arith.constant 0 : i32
    return %arg0, %c0_i32 : i32, i32
  }
  func.func @transform_4(%arg0: i32) -> (i32, i32) {
    %c0_i32 = arith.constant 0 : i32
    %c0_i32_0 = arith.constant 0 : i32
    %c0_i32_1 = arith.constant 0 : i32
    return %c0_i32, %c0_i32_0 : i32, i32
  }
  func.func @transform_5(%arg0: i32) -> (i32, i32) {
    %c0_i32 = arith.constant 0 : i32
    %c0_i32_0 = arith.constant 0 : i32
    return %arg0, %c0_i32 : i32, i32
  }
}

</mosaic_0001>

<bundles_post_ra>
// kernel: patch_encoder_forward.1
= control target key start
LH: loop header
LB: loop body
LE: loop exit
PB: predicated region body
PF: predicated region fallthrough
CT: control target
= control target key end

     0   :  { %v1114_v0 = vmov 0   ;;  %s1644_s0 = inlined_call_operand.vmem [shape: s32[128,1], index: 0, kind: input, shape index: {}]   ;;  %s1645_s2 = inlined_call_operand.vmem [shape: bf16[128,128], index: 2, kind: input, shape index: {}]   ;;  %s1646_s3 = inlined_call_operand.vmem [shape: bf16[128,384], index: 3, kind: input, shape index: {}]   ;;  %s1647_s1 = inlined_call_operand.vmem [shape: bf16[128,128], index: 1, kind: input, shape index: {}]   ;;  %s1648_s4 = inlined_call_operand.vmem [shape: f32[2,128], index: 4, kind: input, shape index: {}]   ;;  %s1649_s5 = inlined_call_operand.vmem [shape: f32[160,128], index: 5, kind: output, shape index: {}]  }
   0x1   :  { %1109 = vset.pattern.permute.xlu0 %v1114_v0  ;;  %v217_v1 = vld [vmem:[%s1644_s0] sm:$0xff]  ;;  %v1058_v2 = vld [vmem:[%s1645_s2 + $0x38] sm:$0xff]  ;;  %1110 = vset.pattern.permute.xlu1 %v1114_v0  ;;  %v1057_v3 = vld [vmem:[%s1645_s2 + $0x30] sm:$0xff] }
   0x2   :  { %234 = vperm.xlu0 %1109, %v217_v1   ;;  %1111 = vset.pattern.permute.xlu2 %v1114_v0  ;;  %v219_v4 = vld [vmem:[%s1644_s0 + $0x10] sm:$0xff]  ;;  %v218_v5 = vld [vmem:[%s1644_s0 + $0x8] sm:$0xff]  ;;  %v220_v7 = vld [vmem:[%s1644_s0 + $0x18] sm:$0xff] }
   0x3   :  { %1084 = vmatpush.bf16.msra.mxu2 %v1058_v2  ;;  %1085 = vmatpush.bf16.msra.mxu3 %v1058_v2  ;;  %v1056_v6 = vld [vmem:[%s1645_s2 + $0x28] sm:$0xff]  ;;  %v1055_v8 = vld [vmem:[%s1645_s2 + $0x20] sm:$0xff]  ;;  %v1054_v9 = vld [vmem:[%s1645_s2 + $0x18] sm:$0xff] }
   0x4   :  { %1083 = vmatpush.bf16.msra.mxu1 %v1058_v2  ;;  %240 = vperm.xlu1 %1110, %v219_v4   ;;  %v221_v10 = vld [vmem:[%s1644_s0 + $0x20] sm:$0xff]  ;;  %v224_v11 = vld [vmem:[%s1644_s0 + $0x38] sm:$0xff]  ;;  %v1053_v12 = vld [vmem:[%s1645_s2 + $0x10] sm:$0xff] }
   0x5   :  { %150 = vmatpush.bf16.msra.mxu0 %v1058_v2  ;;  %v223_v13 = vld [vmem:[%s1644_s0 + $0x30] sm:$0xff]  ;;  %246 = vperm.xlu2 %1111, %v221_v10   ;;  %v1052_v14 = vld [vmem:[%s1645_s2 + $0x8] sm:$0xff]  ;;  %v971_v17 = vld [vmem:[%s1646_s3 + $0xb4] sm:$0xf0] }
   0x6   :  { %v222_v15 = vld [vmem:[%s1644_s0 + $0x28] sm:$0xff]  ;;  %v227_v18 = vld [vmem:[%s1644_s0 + $0x50] sm:$0xff]  ;;  %v1051_v21 = vld [vmem:[%s1645_s2] sm:$0xff] }
   0x7   :  { %1087 = vmatpush.bf16.msra.mxu2 %v1057_v3  ;;  %1088 = vmatpush.bf16.msra.mxu3 %v1057_v3  ;;  %v1080_v16 = vld [vmem:[%s1646_s3 + $0xac] sm:$0xf]  ;;  %v969_v19 = vld [vmem:[%s1646_s3 + $0xa8] sm:$0xf]  ;;  %v1081_v20 = vld [vmem:[%s1646_s3 + $0xb0] sm:$0xf0] }
   0x8   :  { %1086 = vmatpush.bf16.msra.mxu1 %v1057_v3  ;;  %v226_v22 = vld [vmem:[%s1644_s0 + $0x48] sm:$0xff]  ;;  %v974_v23 = vor.u32 %v1080_v16, %v971_v17  ;;  %v977_v24 = vld [vmem:[%s1646_s3 + $0xb0] sm:$0xf]  ;;  %v1082_v25 = vld [vmem:[%s1646_s3 + $0xb8] sm:$0xf0]  ;;  %v970_v27 = vor.u32 %v1081_v20, %v969_v19 }
   0x9   :  { %151 = vmatpush.bf16.msra.mxu0 %v1057_v3  ;;  %v1047_v26 = vld [vmem:[%s1647_s1 + $0x20] sm:$0xff]  ;;  %v1049_v28 = vld [vmem:[%s1647_s1 + $0x30] sm:$0xff]  ;;  %v1078_v30 = vld [vmem:[%s1646_s3 + $0x98] sm:$0xf0]  ;;  %v978_v32 = vor.u32 %v1082_v25, %v977_v24 }
   0xa   :  { %237 = vperm.xlu0 %1109, %v218_v5   ;;  %v957_v29 = vld [vmem:[%s1646_s3 + $0x90] sm:$0xf]  ;;  %v1077_v33 = vld [vmem:[%s1646_s3 + $0x94] sm:$0xf]  ;;  %v959_v34 = vld [vmem:[%s1646_s3 + $0x9c] sm:$0xf0] }
   0xb   :  { %1090 = vmatpush.bf16.msra.mxu2 %v1056_v6  ;;  %1091 = vmatpush.bf16.msra.mxu3 %v1056_v6  ;;  %v1045_v31 = vld [vmem:[%s1647_s1 + $0x10] sm:$0xff]  ;;  %v1043_v35 = vld [vmem:[%s1647_s1] sm:$0xff]  ;;  %v965_v36 = vld [vmem:[%s1646_s3 + $0x98] sm:$0xf]  ;;  %v958_v41 = vor.u32 %v1078_v30, %v957_v29  ;;  %v962_v42 = vor.u32 %v1077_v33, %v959_v34 }
   0xc   :  { %1089 = vmatpush.bf16.msra.mxu1 %v1056_v6  ;;  %243 = vperm.xlu1 %1110, %v220_v7   ;;  %v1079_v37 = vld [vmem:[%s1646_s3 + $0xa0] sm:$0xf0]  ;;  %v230_v39 = vld [vmem:[%s1644_s0 + $0x68] sm:$0xff]  ;;  %v945_v43 = vld [vmem:[%s1646_s3 + $0x78] sm:$0xf] }
   0xd   :  { %152 = vmatpush.bf16.msra.mxu0 %v1056_v6  ;;  %249 = vperm.xlu2 %1111, %v222_v15   ;;  %v229_v38 = vld [vmem:[%s1644_s0 + $0x60] sm:$0xff]  ;;  %v966_v45 = vor.u32 %v1079_v37, %v965_v36  ;;  %v1074_v46 = vld [vmem:[%s1646_s3 + $0x7c] sm:$0xf]  ;;  %v947_v47 = vld [vmem:[%s1646_s3 + $0x84] sm:$0xf0] }
   0xe   :  { %v225_v40 = vld [vmem:[%s1644_s0 + $0x40] sm:$0xff]  ;;  %v1076_v49 = vld [vmem:[%s1646_s3 + $0x88] sm:$0xf0]  ;;  %v950_v51 = vor.u32 %v1074_v46, %v947_v47  ;;  %v935_v56 = vld [vmem:[%s1646_s3 + $0x6c] sm:$0xf0] }
   0xf   :  { %1093 = vmatpush.bf16.msra.mxu2 %v1055_v8  ;;  %1094 = vmatpush.bf16.msra.mxu3 %v1055_v8  ;;  %v1075_v44 = vld [vmem:[%s1646_s3 + $0x80] sm:$0xf0]  ;;  %v953_v48 = vld [vmem:[%s1646_s3 + $0x80] sm:$0xf]  ;;  %v1072_v53 = vld [vmem:[%s1646_s3 + $0x68] sm:$0xf0] }
  0x10   :  { %1092 = vmatpush.bf16.msra.mxu1 %v1055_v8  ;;  %v946_v50 = vor.u32 %v1075_v44, %v945_v43  ;;  %v933_v52 = vld [vmem:[%s1646_s3 + $0x60] sm:$0xf]  ;;  %v954_v54 = vor.u32 %v1076_v49, %v953_v48  ;;  %v1071_v55 = vld [vmem:[%s1646_s3 + $0x64] sm:$0xf]  ;;  %v941_v57 = vld [vmem:[%s1646_s3 + $0x68] sm:$0xf] }
  0x11   :  { %153 = vmatpush.bf16.msra.mxu0 %v1055_v8  ;;  %v1073_v58 = vld [vmem:[%s1646_s3 + $0x70] sm:$0xf0]  ;;  %v934_v59 = vor.u32 %v1072_v53, %v933_v52  ;;  %v228_v60 = vld [vmem:[%s1644_s0 + $0x58] sm:$0xff]  ;;  %v938_v61 = vor.u32 %v1071_v55, %v935_v56  ;;  %v921_v62 = vld [vmem:[%s1646_s3 + $0x48] sm:$0xf] }
  0x12   :  { %252 = vperm.xlu0 %1109, %v223_v13   ;;  %v1069_v63 = vld [vmem:[%s1646_s3 + $0x50] sm:$0xf0]  ;;  %v232_v0 = vld [vmem:[%s1644_s0 + $0x78] sm:$0xff]  ;;  %v942_v1 = vor.u32 %v1073_v58, %v941_v57  ;;  %v1068_v2 = vld [vmem:[%s1646_s3 + $0x4c] sm:$0xf] }
  0x13   :  { %1096 = vmatpush.bf16.msra.mxu2 %v1054_v9  ;;  %1097 = vmatpush.bf16.msra.mxu3 %v1054_v9  ;;  %v923_v3 = vld [vmem:[%s1646_s3 + $0x54] sm:$0xf0]  ;;  %v1048_v4 = vld [vmem:[%s1647_s1 + $0x28] sm:$0xff]  ;;  %v922_v5 = vor.u32 %v1069_v63, %v921_v62  ;;  %v929_v6 = vld [vmem:[%s1646_s3 + $0x50] sm:$0xf] }
  0x14   :  { %1095 = vmatpush.bf16.msra.mxu1 %v1054_v9  ;;  %255 = vperm.xlu1 %1110, %v224_v11   ;;  %v1070_v7 = vld [vmem:[%s1646_s3 + $0x58] sm:$0xf0]  ;;  %v1044_v13 = vld [vmem:[%s1647_s1 + $0x8] sm:$0xff]  ;;  %v1065_v15 = vld [vmem:[%s1646_s3 + $0x34] sm:$0xf] }
  0x15   :  { %154 = vmatpush.bf16.msra.mxu0 %v1054_v9  ;;  %258 = vperm.xlu2 %1111, %v225_v40   ;;  %v1050_v8 = vld [vmem:[%s1647_s1 + $0x38] sm:$0xff]  ;;  %v909_v9 = vld [vmem:[%s1646_s3 + $0x30] sm:$0xf]  ;;  %v911_v16 = vld [vmem:[%s1646_s3 + $0x3c] sm:$0xf0] }
  0x16   :  { %v1066_v10 = vld [vmem:[%s1646_s3 + $0x38] sm:$0xf0]  ;;  %v1067_v19 = vld [vmem:[%s1646_s3 + $0x40] sm:$0xf0]  ;;  %v914_v20 = vor.u32 %v1065_v15, %v911_v16  ;;  %v1060_v33 = vld [vmem:[%s1646_s3 + $0x8] sm:$0xf0] }
  0x17   :  { %1099 = vmatpush.bf16.msra.mxu2 %v1053_v12  ;;  %1100 = vmatpush.bf16.msra.mxu3 %v1053_v12  ;;  %v1046_v11 = vld [vmem:[%s1647_s1 + $0x18] sm:$0xff]  ;;  %v910_v17 = vor.u32 %v1066_v10, %v909_v9  ;;  %v887_v36 = vld [vmem:[%s1646_s3 + $0xc] sm:$0xf0]  ;;  %v893_v37 = vld [vmem:[%s1646_s3 + $0x8] sm:$0xf] }
  0x18   :  { %1098 = vmatpush.bf16.msra.mxu1 %v1053_v12  ;;  %v1062_v24 = vld [vmem:[%s1646_s3 + $0x1c] sm:$0xf]  ;;  %v1115_v47 = vmov 1.0|1.0  }
  0x19   :  { %155 = vmatpush.bf16.msra.mxu0 %v1053_v12  ;;  %v926_v12 = vor.u32 %v1068_v2, %v923_v3  ;;  %v1453_v3 = vld [vmem:[%s1648_s4] ss:$0 sm:$0xff] }
  0x1a   :  { %261 = vperm.xlu0 %1109, %v226_v22   ;;  %v897_v22 = vld [vmem:[%s1646_s3 + $0x18] sm:$0xf] }
  0x1b   :  { %1102 = vmatpush.bf16.msra.mxu2 %v1052_v14  ;;  %1103 = vmatpush.bf16.msra.mxu3 %v1052_v14 }
  0x1c   :  { %1101 = vmatpush.bf16.msra.mxu1 %v1052_v14  ;;  %264 = vperm.xlu1 %1110, %v227_v18   ;;  %v917_v18 = vld [vmem:[%s1646_s3 + $0x38] sm:$0xf] }
  0x1d   :  { %156 = vmatpush.bf16.msra.mxu0 %v1052_v14  ;;  %267 = vperm.xlu2 %1111, %v228_v60   ;;  %v930_v14 = vor.u32 %v1070_v7, %v929_v6 }
  0x1f   :  { %1105 = vmatpush.bf16.msra.mxu2 %v1051_v21  ;;  %1106 = vmatpush.bf16.msra.mxu3 %v1051_v21 }
  0x20   :  { %1104 = vmatpush.bf16.msra.mxu1 %v1051_v21 }
  0x21   :  { %157 = vmatpush.bf16.msra.mxu0 %v1051_v21  ;;  %v918_v21 = vor.u32 %v1067_v19, %v917_v18 }
  0x22   :  { %178 = vmatmul.bf16.vlgmr.msra.gmra.mxu2 %v1047_v26  ;;  %188 = vmatmul.bf16.vlgmr.msra.gmra.mxu3 %v1049_v28  ;;  %v899_v26 = vld [vmem:[%s1646_s3 + $0x24] sm:$0xf0]  ;;  %v1064_v28 = vld [vmem:[%s1646_s3 + $0x28] sm:$0xf0] }
  0x23   :  { %594 = vmatpush.bf16.msrb.mxu2 %v974_v23  ;;  %168 = vmatmul.bf16.vlgmr.msra.gmra.mxu1 %v1045_v31  ;;  %v1063_v23 = vld [vmem:[%s1646_s3 + $0x20] sm:$0xf0]  ;;  %v902_v29 = vor.u32 %v1062_v24, %v899_v26  ;;  %v231_v31 = vld [vmem:[%s1644_s0 + $0x70] sm:$0xff] }
  0x24   :  { %545 = vmatpush.bf16.msrb.mxu1 %v970_v27  ;;  %643 = vmatpush.bf16.msrb.mxu3 %v978_v32  ;;  %v898_v25 = vor.u32 %v1063_v23, %v897_v22  ;;  %v905_v27 = vld [vmem:[%s1646_s3 + $0x20] sm:$0xf] }
  0x25   :  { %158 = vmatmul.bf16.vlgmr.msra.gmra.mxu0 %v1043_v35  ;;  %273 = vperm.xlu1 %1110, %v230_v39   ;;  %v906_v30 = vor.u32 %v1064_v28, %v905_v27  ;;  %v885_v32 = vld [vmem:[%s1646_s3] sm:$0xf]  ;;  %v1059_v35 = vld [vmem:[%s1646_s3 + $0x4] sm:$0xf]  ;;  %v1061_v39 = vld [vmem:[%s1646_s3 + $0x10] sm:$0xf0] }
  0x26   :  { %270 = vperm.xlu0 %1109, %v229_v38   ;;  %276 = vperm.xlu2 %1111, %v231_v31   ;;  %v886_v34 = vor.u32 %v1060_v33, %v885_v32  ;;  %v890_v38 = vor.u32 %v1059_v35, %v887_v36  ;;  %v894_v40 = vor.u32 %v1061_v39, %v893_v37 }
  0x27   :  { %595 = vmatpush.bf16.msrb.mxu2 %v962_v42 }
  0x28   :  { %546 = vmatpush.bf16.msrb.mxu1 %v958_v41  ;;  %644 = vmatpush.bf16.msrb.mxu3 %v966_v45  ;;  %v215_v41 = vlaneseq }
  0x2a   :  { %v1386_v43 = vand.u32 127, %v215_v41 }
  0x2b   :  { %596 = vmatpush.bf16.msrb.mxu2 %v950_v51 }
  0x2c   :  { %547 = vmatpush.bf16.msrb.mxu1 %v946_v50  ;;  %645 = vmatpush.bf16.msrb.mxu3 %v954_v54 }
  0x2e   :  { %279 = vperm.xlu0 %1109, %v232_v0  }
  0x2f   :  { %597 = vmatpush.bf16.msrb.mxu2 %v938_v61 }
  0x30   :  { %548 = vmatpush.bf16.msrb.mxu1 %v934_v59  ;;  %646 = vmatpush.bf16.msrb.mxu3 %v942_v1 }
  0x32   :  { %183 = vmatmul.bf16.gmra.mxu2 %v1048_v4  ;;  %193 = vmatmul.bf16.gmra.mxu3 %v1050_v8 }
  0x33   :  { %173 = vmatmul.bf16.gmra.mxu1 %v1046_v11  ;;  %598 = vmatpush.bf16.msrb.mxu2 %v926_v12 }
  0x34   :  { %549 = vmatpush.bf16.msrb.mxu1 %v922_v5  ;;  %647 = vmatpush.bf16.msrb.mxu3 %v930_v14 }
  0x35   :  { %163 = vmatmul.bf16.gmra.mxu0 %v1044_v13 }
  0x37   :  { %599 = vmatpush.bf16.msrb.mxu2 %v914_v20 }
  0x38   :  { %550 = vmatpush.bf16.msrb.mxu1 %v910_v17  ;;  %648 = vmatpush.bf16.msrb.mxu3 %v918_v21 }
  0x3b   :  { %600 = vmatpush.bf16.msrb.mxu2 %v902_v29 }
  0x3c   :  { %551 = vmatpush.bf16.msrb.mxu1 %v898_v25  ;;  %649 = vmatpush.bf16.msrb.mxu3 %v906_v30 }
  0x3f   :  { %601 = vmatpush.bf16.msrb.mxu2 %v890_v38 }
  0x40   :  { %552 = vmatpush.bf16.msrb.mxu1 %v886_v34  ;;  %650 = vmatpush.bf16.msrb.mxu3 %v894_v40 }
  0x5f   :  { %v247_v50 = vpop.permute.xlu2 %246 }
  0x60   :  { %vm285_vm6 = vcmp.eq.s32.totalorder %v247_v50, %v1386_v43 }
  0x67   :  { %v250_v51 = vpop.permute.xlu2 %249 }
  0x68   :  { %vm286_vm7 = vcmp.eq.s32.totalorder %v250_v51, %v1386_v43 }
  0x69   :  { %vm1420_vm8 = vmpackc.low %vm286_vm7, %vm285_vm6 }
  0x6f   :  { %v259_v1 = vpop.permute.xlu2 %258 }
  0x70   :  { %vm289_vm12 = vcmp.eq.s32.totalorder %v259_v1, %v1386_v43 }
  0x74   :  { %v235_v42 = vpop.permute.xlu0 %234 }
  0x75   :  { %vm281_vm0 = vcmp.eq.s32.totalorder %v235_v42, %v1386_v43 }
  0x76   :  { %v241_v45 = vpop.permute.xlu1 %240 }
  0x77   :  { %vm283_vm3 = vcmp.eq.s32.totalorder %v241_v45, %v1386_v43  ;;  %v268_v36 = vpop.permute.xlu2 %267 }
  0x78   :  { %vm292_vm15 = vcmp.eq.s32.totalorder %v268_v36, %v1386_v43 }
  0x7c   :  { %v238_v44 = vpop.permute.xlu0 %237 }
  0x7d   :  { %vm282_vm1 = vcmp.eq.s32.totalorder %v238_v44, %v1386_v43 }
  0x7e   :  { %vm1390_vm2 = vmpackc.low %vm282_vm1, %vm281_vm0  ;;  %v244_v48 = vpop.permute.xlu1 %243 }
  0x7f   :  { %980 = vmatmul.msk.bf16.vlgmr.msrb.gmra.mxu1 %vm1390_vm2, %v1115_v47  ;;  %996 = vmatmul.msk.bf16.vlgmr.msrb.gmra.mxu2 %vm1390_vm2, %v1115_v47  ;;  %vm284_vm4 = vcmp.eq.s32.totalorder %v244_v48, %v1386_v43 }
  0x80   :  { %1012 = vmatmul.msk.bf16.vlgmr.msrb.gmra.mxu3 %vm1390_vm2, %v1115_v47  ;;  %vm1405_vm5 = vmpackc.low %vm284_vm4, %vm283_vm3 }
  0x84   :  { %v253_v56 = vpop.permute.xlu0 %252 }
  0x85   :  { %vm287_vm10 = vcmp.eq.s32.totalorder %v253_v56, %v1386_v43 }
  0x86   :  { %v256_v55 = vpop.permute.xlu1 %255 }
  0x87   :  { %vm288_vm9 = vcmp.eq.s32.totalorder %v256_v55, %v1386_v43 }
  0x88   :  { %vm1435_vm11 = vmpackc.low %vm288_vm9, %vm287_vm10 }
  0x8c   :  { %v262_v2 = vpop.permute.xlu0 %261 }
  0x8d   :  { %vm290_vm13 = vcmp.eq.s32.totalorder %v262_v2, %v1386_v43 }
  0x8e   :  { %vm1461_vm14 = vmpackc.low %vm290_vm13, %vm289_vm12  ;;  %v265_v37 = vpop.permute.xlu1 %264 }
  0x8f   :  { %982 = vmatmul.msk.bf16.gmra.mxu1 %vm1405_vm5, %v1115_v47  ;;  %998 = vmatmul.msk.bf16.gmra.mxu2 %vm1405_vm5, %v1115_v47  ;;  %vm291_vm0 = vcmp.eq.s32.totalorder %v265_v37, %v1386_v43 }
  0x90   :  { %1014 = vmatmul.msk.bf16.gmra.mxu3 %vm1405_vm5, %v1115_v47  ;;  %vm1486_vm1 = vmpackc.low %vm292_vm15, %vm291_vm0 }
  0x9f   :  { %984 = vmatmul.msk.bf16.gmra.mxu1 %vm1420_vm8, %v1115_v47  ;;  %1000 = vmatmul.msk.bf16.gmra.mxu2 %vm1420_vm8, %v1115_v47 }
  0xa0   :  { %1016 = vmatmul.msk.bf16.gmra.mxu3 %vm1420_vm8, %v1115_v47  ;;  %v169_v57 = vpop.f32.mrf.mxu1 }
  0xa1   :  { %v170_v40 = vadd.f32 %v1453_v3, %v169_v57 }
  0xa2   :  { %v1445_v61 = vpop.f32.mrf.mxu0 }
  0xa5   :  { %v179_v53 = vpop.f32.mrf.mxu2  ;;  %v189_v54 = vpop.f32.mrf.mxu3 }
  0xa6   :  { %v190_v11 = vadd.f32 %v1453_v3, %v189_v54  ;;  %v180_v21 = vadd.f32 %v1453_v3, %v179_v53  ;;  %v203_v53 = vpack.c.bf16 %v170_v40, %v170_v40 }
  0xa8   :  { %v171_v62 = vpop.f32.mrf.mxu1  ;;  %v211_v18 = vpack.c.bf16 %v190_v11, %v190_v11  ;;  %v207_v30 = vpack.c.bf16 %v180_v21, %v180_v21 }
  0xa9   :  { %v172_v41 = vadd.f32 %v1453_v3, %v171_v62  ;;  %v517_v62 = vunpack.c.l.b16 %v203_v53 }
  0xaa   :  { %v1457_v4 = vpop.f32.mrf.mxu0  ;;  %v525_v29 = vunpack.c.l.b16 %v211_v18  ;;  %v521_v39 = vunpack.c.l.b16 %v207_v30 }
  0xab   :  { %v204_v54 = vpack.c.bf16 %v172_v41, %v172_v41 }
  0xad   :  { %v181_v59 = vpop.f32.mrf.mxu2  ;;  %v191_v60 = vpop.f32.mrf.mxu3  ;;  %v518_v1 = vunpack.c.l.b16 %v204_v54 }
  0xae   :  { %v192_v7 = vadd.f32 %v1453_v3, %v191_v60  ;;  %v182_v22 = vadd.f32 %v1453_v3, %v181_v59 }
  0xaf   :  { %986 = vmatmul.msk.bf16.gmra.mxu1 %vm1435_vm11, %v1115_v47  ;;  %1002 = vmatmul.msk.bf16.gmra.mxu2 %vm1435_vm11, %v1115_v47 }
  0xb0   :  { %1018 = vmatmul.msk.bf16.gmra.mxu3 %vm1435_vm11, %v1115_v47  ;;  %v174_v6 = vpop.f32.mrf.mxu1  ;;  %v212_v14 = vpack.c.bf16 %v192_v7, %v192_v7  ;;  %v208_v31 = vpack.c.bf16 %v182_v22, %v182_v22  ;;  %v1544_v22 = vld [vmem:[%s1648_s4 + $0x1] ss:$0 sm:$0xff] }
  0xb1   :  { %v175_v32 = vadd.f32 %v1453_v3, %v174_v6 }
  0xb2   :  { %v164_v23 = vpop.f32.mrf.mxu0  ;;  %v526_v24 = vunpack.c.l.b16 %v212_v14  ;;  %v522_v42 = vunpack.c.l.b16 %v208_v31  ;;  %v271_v14 = vpop.permute.xlu0 %270 }
  0xb3   :  { %v205_v44 = vpack.c.bf16 %v175_v32, %v175_v32  ;;  %v165_v55 = vadd.f32 %v1453_v3, %v164_v23  ;;  %vm293_vm3 = vcmp.eq.s32.totalorder %v271_v14, %v1386_v43 }
  0xb4   :  { %v535_v38 = vpack.c.b16 %v526_v24, %v525_v29  ;;  %v533_v60 = vpack.c.b16 %v522_v42, %v521_v39 }
  0xb5   :  { %v184_v63 = vpop.f32.mrf.mxu2  ;;  %v194_v0 = vpop.f32.mrf.mxu3  ;;  %v519_v56 = vunpack.c.l.b16 %v205_v44  ;;  %v201_v2 = vpack.c.bf16 %v165_v55, %v165_v55 }
  0xb6   :  { %v195_v5 = vadd.f32 %v1453_v3, %v194_v0  ;;  %v185_v15 = vadd.f32 %v1453_v3, %v184_v63  ;;  %v160_v63 = vadd.f32 %v1453_v3, %v1445_v61  ;;  %v162_v0 = vadd.f32 %v1453_v3, %v1457_v4 }
  0xb8   :  { %v213_v12 = vpack.c.bf16 %v195_v5, %v195_v5  ;;  %v209_v25 = vpack.c.bf16 %v185_v15, %v185_v15  ;;  %v176_v28 = vpop.f32.mrf.mxu1  ;;  %v199_v7 = vpack.c.bf16 %v160_v63, %v160_v63 }
  0xb9   :  { %v177_v35 = vadd.f32 %v1453_v3, %v176_v28 }
  0xba   :  { %v527_v19 = vunpack.c.l.b16 %v213_v12  ;;  %v523_v33 = vunpack.c.l.b16 %v209_v25  ;;  %v166_v51 = vpop.f32.mrf.mxu0  ;;  %v274_v12 = vpop.permute.xlu1 %273  ;;  %v513_v61 = vunpack.c.l.b16 %v199_v7 }
  0xbb   :  { %v206_v45 = vpack.c.bf16 %v177_v35, %v177_v35  ;;  %v167_v59 = vadd.f32 %v1453_v3, %v166_v51  ;;  %vm294_vm4 = vcmp.eq.s32.totalorder %v274_v12, %v1386_v43  ;;  %v280_v18 = vpop.permute.xlu0 %279 }
  0xbc   :  { %vm1507_vm6 = vmpackc.low %vm294_vm4, %vm293_vm3  ;;  %vm296_vm9 = vcmp.eq.s32.totalorder %v280_v18, %v1386_v43 }
  0xbd   :  { %v186_v9 = vpop.f32.mrf.mxu2  ;;  %v196_v10 = vpop.f32.mrf.mxu3  ;;  %v520_v57 = vunpack.c.l.b16 %v206_v45  ;;  %v202_v5 = vpack.c.bf16 %v167_v59, %v167_v59 }
  0xbe   :  { %v197_v13 = vadd.f32 %v1453_v3, %v196_v10  ;;  %v187_v16 = vadd.f32 %v1453_v3, %v186_v9  ;;  %v200_v9 = vpack.c.bf16 %v162_v0, %v162_v0  ;;  %v515_v10 = vunpack.c.l.b16 %v201_v2 }
  0xbf   :  { %988 = vmatmul.msk.bf16.gmra.mxu1 %vm1461_vm14, %v1115_v47  ;;  %1004 = vmatmul.msk.bf16.gmra.mxu2 %vm1461_vm14, %v1115_v47  ;;  %v532_v6 = vpack.c.b16 %v520_v57, %v519_v56  ;;  %v516_v11 = vunpack.c.l.b16 %v202_v5 }
  0xc0   :  { %v214_v17 = vpack.c.bf16 %v197_v13, %v197_v13  ;;  %1020 = vmatmul.msk.bf16.gmra.mxu3 %vm1461_vm14, %v1115_v47  ;;  %v210_v26 = vpack.c.bf16 %v187_v16, %v187_v16  ;;  %v531_v13 = vpack.c.b16 %v518_v1, %v517_v62  ;;  %v514_v15 = vunpack.c.l.b16 %v200_v9 }
  0xc1   :  { %v530_v3 = vpack.c.b16 %v516_v11, %v515_v10 }
  0xc2   :  { %v528_v20 = vunpack.c.l.b16 %v214_v17  ;;  %v524_v34 = vunpack.c.l.b16 %v210_v26  ;;  %v529_v16 = vpack.c.b16 %v514_v15, %v513_v61  ;;  %v277_v17 = vpop.permute.xlu2 %276 }
  0xc3   :  { %vm295_vm7 = vcmp.eq.s32.totalorder %v277_v17, %v1386_v43 }
  0xc4   :  { %v536_v27 = vpack.c.b16 %v528_v20, %v527_v19  ;;  %v534_v50 = vpack.c.b16 %v524_v34, %v523_v33  ;;  %vm1525_vm10 = vmpackc.low %vm296_vm9, %vm295_vm7 }
  0xc6   :  { %692 = vmatpush.bf16.msrb.mxu0 %v536_v27 }
  0xca   :  { %693 = vmatpush.bf16.msrb.mxu0 %v535_v38 }
  0xce   :  { %694 = vmatpush.bf16.msrb.mxu0 %v534_v50 }
  0xcf   :  { %990 = vmatmul.msk.bf16.gmra.mxu1 %vm1486_vm1, %v1115_v47  ;;  %1006 = vmatmul.msk.bf16.gmra.mxu2 %vm1486_vm1, %v1115_v47 }
  0xd0   :  { %1022 = vmatmul.msk.bf16.gmra.mxu3 %vm1486_vm1, %v1115_v47 }
  0xd2   :  { %695 = vmatpush.bf16.msrb.mxu0 %v533_v60 }
  0xd6   :  { %696 = vmatpush.bf16.msrb.mxu0 %v532_v6 }
  0xda   :  { %697 = vmatpush.bf16.msrb.mxu0 %v531_v13 }
  0xde   :  { %698 = vmatpush.bf16.msrb.mxu0 %v530_v3 }
  0xdf   :  { %992 = vmatmul.msk.bf16.gmra.mxu1 %vm1507_vm6, %v1115_v47  ;;  %1008 = vmatmul.msk.bf16.gmra.mxu2 %vm1507_vm6, %v1115_v47 }
  0xe0   :  { %1024 = vmatmul.msk.bf16.gmra.mxu3 %vm1507_vm6, %v1115_v47 }
  0xe2   :  { %699 = vmatpush.bf16.msrb.mxu0 %v529_v16 }
  0xe5   :  { %1028 = vmatmul.msk.bf16.vlgmr.msrb.gmra.mxu0 %vm1390_vm2, %v1115_v47 }
  0xef   :  { %994 = vmatmul.msk.bf16.gmra.mxu1 %vm1525_vm10, %v1115_v47  ;;  %1010 = vmatmul.msk.bf16.gmra.mxu2 %vm1525_vm10, %v1115_v47 }
  0xf0   :  { %1026 = vmatmul.msk.bf16.gmra.mxu3 %vm1525_vm10, %v1115_v47 }
  0xf5   :  { %1030 = vmatmul.msk.bf16.gmra.mxu0 %vm1405_vm5, %v1115_v47 }
  0xfc   :  { %v554_v43 = vpop.f32.mrf.mxu1 }
 0x102   :  { %v603_v46 = vpop.f32.mrf.mxu2 }
 0x103   :  { %v729_v20 = vadd.f32 %v603_v46, %v554_v43  ;;  %v652_v21 = vpop.f32.mrf.mxu3 }
 0x104   :  { %v556_v23 = vpop.f32.mrf.mxu1 }
 0x105   :  { %v745_v24 = vadd.f32 %v729_v20, %v652_v21  ;;  %1032 = vmatmul.msk.bf16.gmra.mxu0 %vm1420_vm8, %v1115_v47 }
 0x107   :  { %v767_v25 = vadd.f32 %v1544_v22, %v745_v24 }
 0x109   :  { %773 = vst [vmem:[%s1649_s5] sm:$0xff] %v767_v25 }
 0x10a   :  { %v605_v49 = vpop.f32.mrf.mxu2 }
 0x10b   :  { %v730_v26 = vadd.f32 %v605_v49, %v556_v23  ;;  %v654_v27 = vpop.f32.mrf.mxu3 }
 0x10c   :  { %v559_v28 = vpop.f32.mrf.mxu1 }
 0x10d   :  { %v746_v29 = vadd.f32 %v730_v26, %v654_v27 }
 0x10f   :  { %v768_v30 = vadd.f32 %v1544_v22, %v746_v29 }
 0x111   :  { %774 = vst [vmem:[%s1649_s5 + $0x8] sm:$0xff] %v768_v30 }
 0x112   :  { %v608_v31 = vpop.f32.mrf.mxu2 }
 0x113   :  { %v731_v52 = vadd.f32 %v608_v31, %v559_v28  ;;  %v657_v32 = vpop.f32.mrf.mxu3 }
 0x114   :  { %v561_v33 = vpop.f32.mrf.mxu1 }
 0x115   :  { %v747_v34 = vadd.f32 %v731_v52, %v657_v32  ;;  %1034 = vmatmul.msk.bf16.gmra.mxu0 %vm1435_vm11, %v1115_v47 }
 0x117   :  { %v769_v35 = vadd.f32 %v1544_v22, %v747_v34 }
 0x119   :  { %775 = vst [vmem:[%s1649_s5 + $0x10] sm:$0xff] %v769_v35 }
 0x11a   :  { %v610_v36 = vpop.f32.mrf.mxu2 }
 0x11b   :  { %v732_v37 = vadd.f32 %v610_v36, %v561_v33  ;;  %v659_v38 = vpop.f32.mrf.mxu3 }
 0x11c   :  { %v564_v39 = vpop.f32.mrf.mxu1 }
 0x11d   :  { %v748_v40 = vadd.f32 %v732_v37, %v659_v38 }
 0x11f   :  { %v770_v41 = vadd.f32 %v1544_v22, %v748_v40 }
 0x121   :  { %776 = vst [vmem:[%s1649_s5 + $0x18] sm:$0xff] %v770_v41 }
 0x122   :  { %v613_v42 = vpop.f32.mrf.mxu2 }
 0x123   :  { %v733_v58 = vadd.f32 %v613_v42, %v564_v39  ;;  %v662_v44 = vpop.f32.mrf.mxu3 }
 0x124   :  { %v566_v45 = vpop.f32.mrf.mxu1 }
 0x125   :  { %v749_v50 = vadd.f32 %v733_v58, %v662_v44  ;;  %1036 = vmatmul.msk.bf16.gmra.mxu0 %vm1461_vm14, %v1115_v47 }
 0x127   :  { %v771_v51 = vadd.f32 %v1544_v22, %v749_v50 }
 0x129   :  { %777 = vst [vmem:[%s1649_s5 + $0x20] sm:$0xff] %v771_v51 }
 0x12a   :  { %v615_v53 = vpop.f32.mrf.mxu2 }
 0x12b   :  { %v734_v54 = vadd.f32 %v615_v53, %v566_v45  ;;  %v664_v55 = vpop.f32.mrf.mxu3 }
 0x12c   :  { %v569_v56 = vpop.f32.mrf.mxu1 }
 0x12d   :  { %v750_v57 = vadd.f32 %v734_v54, %v664_v55 }
 0x12f   :  { %v772_v59 = vadd.f32 %v1544_v22, %v750_v57 }
 0x131   :  { %778 = vst [vmem:[%s1649_s5 + $0x28] sm:$0xff] %v772_v59 }
 0x132   :  { %v618_v60 = vpop.f32.mrf.mxu2 }
 0x133   :  { %v735_v8 = vadd.f32 %v618_v60, %v569_v56  ;;  %v667_v62 = vpop.f32.mrf.mxu3 }
 0x134   :  { %v571_v63 = vpop.f32.mrf.mxu1 }
 0x135   :  { %v1579_v0 = vadd.f32 %v735_v8, %v667_v62  ;;  %1038 = vmatmul.msk.bf16.gmra.mxu0 %vm1486_vm1, %v1115_v47 }
 0x137   :  { %781 = vst [vmem:[%s1649_s5 + $0x40] sm:$0xff] %v1579_v0 }
 0x13a   :  { %v620_v1 = vpop.f32.mrf.mxu2 }
 0x13b   :  { %v736_v2 = vadd.f32 %v620_v1, %v571_v63  ;;  %v669_v5 = vpop.f32.mrf.mxu3 }
 0x13c   :  { %v574_v6 = vpop.f32.mrf.mxu1 }
 0x13d   :  { %v1588_v7 = vadd.f32 %v736_v2, %v669_v5 }
 0x13f   :  { %782 = vst [vmem:[%s1649_s5 + $0x48] sm:$0xff] %v1588_v7 }
 0x142   :  { %v623_v9 = vpop.f32.mrf.mxu2 }
 0x143   :  { %v737_v10 = vadd.f32 %v623_v9, %v574_v6  ;;  %v672_v48 = vpop.f32.mrf.mxu3 }
 0x144   :  { %v576_v11 = vpop.f32.mrf.mxu1 }
 0x145   :  { %v753_v12 = vadd.f32 %v737_v10, %v672_v48  ;;  %1040 = vmatmul.msk.bf16.gmra.mxu0 %vm1507_vm6, %v1115_v47 }
 0x147   :  { %v783_v13 = vadd.f32 %v1544_v22, %v753_v12 }
 0x149   :  { %789 = vst [vmem:[%s1649_s5 + $0x50] sm:$0xff] %v783_v13 }
 0x14a   :  { %v625_v14 = vpop.f32.mrf.mxu2 }
 0x14b   :  { %v738_v61 = vadd.f32 %v625_v14, %v576_v11  ;;  %v674_v15 = vpop.f32.mrf.mxu3 }
 0x14c   :  { %v579_v3 = vpop.f32.mrf.mxu1 }
 0x14d   :  { %v754_v16 = vadd.f32 %v738_v61, %v674_v15 }
 0x14f   :  { %v784_v17 = vadd.f32 %v1544_v22, %v754_v16 }
 0x151   :  { %790 = vst [vmem:[%s1649_s5 + $0x58] sm:$0xff] %v784_v17 }
 0x152   :  { %v628_v18 = vpop.f32.mrf.mxu2 }
 0x153   :  { %v739_v4 = vadd.f32 %v628_v18, %v579_v3  ;;  %v677_v43 = vpop.f32.mrf.mxu3 }
 0x154   :  { %v581_v46 = vpop.f32.mrf.mxu1 }
 0x155   :  { %v755_v20 = vadd.f32 %v739_v4, %v677_v43  ;;  %1042 = vmatmul.msk.bf16.gmra.mxu0 %vm1525_vm10, %v1115_v47 }
 0x157   :  { %v785_v21 = vadd.f32 %v1544_v22, %v755_v20 }
 0x159   :  { %791 = vst [vmem:[%s1649_s5 + $0x60] sm:$0xff] %v785_v21 }
 0x15a   :  { %v630_v23 = vpop.f32.mrf.mxu2 }
 0x15b   :  { %v740_v24 = vadd.f32 %v630_v23, %v581_v46  ;;  %v679_v25 = vpop.f32.mrf.mxu3 }
 0x15c   :  { %v584_v49 = vpop.f32.mrf.mxu1 }
 0x15d   :  { %v756_v26 = vadd.f32 %v740_v24, %v679_v25 }
 0x15f   :  { %v786_v27 = vadd.f32 %v1544_v22, %v756_v26 }
 0x161   :  { %792 = vst [vmem:[%s1649_s5 + $0x68] sm:$0xff] %v786_v27 }
 0x162   :  { %v633_v28 = vpop.f32.mrf.mxu2  ;;  %v701_v19 = vpop.f32.mrf.mxu0 }
 0x163   :  { %v741_v47 = vadd.f32 %v633_v28, %v584_v49  ;;  %v682_v29 = vpop.f32.mrf.mxu3 }
 0x164   :  { %v586_v31 = vpop.f32.mrf.mxu1 }
 0x165   :  { %v757_v30 = vadd.f32 %v741_v47, %v682_v29 }
 0x167   :  { %v787_v52 = vadd.f32 %v1544_v22, %v757_v30 }
 0x169   :  { %793 = vst [vmem:[%s1649_s5 + $0x70] sm:$0xff] %v787_v52 }
 0x16a   :  { %v635_v32 = vpop.f32.mrf.mxu2  ;;  %v702_v33 = vpop.f32.mrf.mxu0 }
 0x16b   :  { %v742_v34 = vadd.f32 %v635_v32, %v586_v31  ;;  %v684_v35 = vpop.f32.mrf.mxu3 }
 0x16c   :  { %v589_v38 = vpop.f32.mrf.mxu1 }
 0x16d   :  { %v758_v36 = vadd.f32 %v742_v34, %v684_v35 }
 0x16f   :  { %v788_v37 = vadd.f32 %v1544_v22, %v758_v36 }
 0x171   :  { %794 = vst [vmem:[%s1649_s5 + $0x78] sm:$0xff] %v788_v37 }
 0x172   :  { %v638_v39 = vpop.f32.mrf.mxu2  ;;  %v704_v40 = vpop.f32.mrf.mxu0 }
 0x173   :  { %v743_v41 = vadd.f32 %v638_v39, %v589_v38  ;;  %v687_v42 = vpop.f32.mrf.mxu3 }
 0x174   :  { %v591_v44 = vpop.f32.mrf.mxu1 }
 0x175   :  { %v759_v58 = vadd.f32 %v743_v41, %v687_v42 }
 0x177   :  { %797 = vst [vmem:[%s1649_s5 + $0x90] sm:$0xff] %v759_v58 }
 0x17a   :  { %v640_v45 = vpop.f32.mrf.mxu2  ;;  %v705_v50 = vpop.f32.mrf.mxu0 }
 0x17b   :  { %v744_v51 = vadd.f32 %v640_v45, %v591_v44  ;;  %v689_v53 = vpop.f32.mrf.mxu3 }
 0x17d   :  { %v760_v22 = vadd.f32 %v744_v51, %v689_v53 }
 0x17f   :  { %798 = vst [vmem:[%s1649_s5 + $0x98] sm:$0xff] %v760_v22 }
 0x182   :  { %v707_v54 = vpop.f32.mrf.mxu0 }
 0x18a   :  { %v708_v55 = vpop.f32.mrf.mxu0 }
 0x192   :  { %v710_v56 = vpop.f32.mrf.mxu0 }
 0x193   :  { %v761_v57 = vadd.f32 %v1579_v0, %v710_v56 }
 0x195   :  { %779 = vst [vmem:[%s1649_s5 + $0x30] sm:$0xff] %v761_v57 }
 0x19a   :  { %v712_v59 = vpop.f32.mrf.mxu0 }
 0x19b   :  { %v762_v60 = vadd.f32 %v1588_v7, %v712_v59 }
 0x19d   :  { %780 = vst [vmem:[%s1649_s5 + $0x38] sm:$0xff] %v762_v60 }
 0x1a2   :  { %v715_v8 = vpop.f32.mrf.mxu0 }
 0x1aa   :  { %v716_v62 = vpop.f32.mrf.mxu0 }
 0x1b2   :  { %v718_v63 = vpop.f32.mrf.mxu0 }
 0x1ba   :  { %v719_v1 = vpop.f32.mrf.mxu0 }
 0x1c2   :  { %v721_v2 = vpop.f32.mrf.mxu0 }
 0x1ca   :  { %v722_v5 = vpop.f32.mrf.mxu0 }
 0x1d2   :  { %v724_v6 = vpop.f32.mrf.mxu0 }
 0x1d3   :  { %v763_v9 = vadd.f32 %v759_v58, %v724_v6 }
 0x1d5   :  { %795 = vst [vmem:[%s1649_s5 + $0x80] sm:$0xff] %v763_v9 }
 0x1da   :  { %v726_v0 = vpop.f32.mrf.mxu0 }
 0x1db   :  { %v764_v10 = vadd.f32 %v760_v22, %v726_v0 }
 0x1dd   :  { %796 = vst [vmem:[%s1649_s5 + $0x88] sm:$0xff] %v764_v10 }

</bundles_post_ra>
